<compile_context>
chip_gen: v5e
topology: v5e:2x2
jax: 0.10.0
libtpu: 0.0.40
codegen_flags: <defaults>
</compile_context>

<pallas_src>
import functools

import jax
import jax.numpy as jnp
from jax import lax
from jax.experimental import pallas as pl
from jax.experimental.pallas import tpu as pltpu

LN_EPS = 1e-5  # torch.nn.LayerNorm default


# --------------------------------------------------------------------------
# Kernel
# --------------------------------------------------------------------------
def latent_kernel(feat_ref, wt_ref, params_ref, out_ref, acc_ref, *, n_points):
    """Grid = (B/bb, N_pad/bn).

    NOTE: the N axis MUST stay the LAST grid axis and be 'arbitrary' -- the
    persistent accumulator init/finalize pattern below relies on the grid
    iterating all N tiles consecutively for a given batch block.

    feat_ref   : (bb, C, bn)  backbone features tile (any float dtype)
    wt_ref     : (C, L)       pre-transposed nn.Linear weight
    params_ref : (3, L)       rows = [linear bias, ln_gamma, ln_beta]
    out_ref    : (bb, L)      LayerNorm(Linear(mean_N(features)))
    acc_ref    : (bb, C, bn)  f32 running lane-parallel sum (VMEM scratch)
    """
    ni = pl.program_id(1)

    @pl.when(ni == 0)
    def _init():
        acc_ref[...] = jnp.zeros_like(acc_ref)

    # Lane-parallel accumulation: one whole-tile elementwise add (pure VPU).
    # The cross-lane reduction happens once per batch block, in the finalize.
    acc_ref[...] += feat_ref[...].astype(jnp.float32)

    @pl.when(ni == pl.num_programs(1) - 1)
    def _finalize():
        feat_sum = jnp.sum(acc_ref[...], axis=-1)                    # (bb, C)
        feat_mean = feat_sum * (1.0 / n_points)                      # true N
        bias = params_ref[0:1, :]                                    # (1, L)
        gamma = params_ref[1:2, :]
        beta = params_ref[2:3, :]
        z = jnp.dot(feat_mean, wt_ref[...],
                    preferred_element_type=jnp.float32) + bias       # (bb, L)
        mu = jnp.mean(z, axis=-1, keepdims=True)
        var = jnp.mean((z - mu) * (z - mu), axis=-1, keepdims=True)
        out_ref[...] = (z - mu) * lax.rsqrt(var + LN_EPS) * gamma + beta


# --------------------------------------------------------------------------
# Tile selection (byte-budget / generation aware)
# --------------------------------------------------------------------------
def _round_up(x, m):
    return ((x + m - 1) // m) * m


def _physical_vmem_bytes():
    """Per-core VMEM capacity; conservative v7x fallback if query fails."""
    try:
        info = pltpu.get_tpu_info()
        v = getattr(info, "vmem_capacity_bytes", None)
        if v:
            return int(v)
    except Exception:
        pass
    return 64 * 1024 * 1024  # v7x per-TensorCore VMEM (smallest generation)


def _pick_tiles(B, C, N, feat_itemsize, L, phys_vmem):
    """Pick (bb, bn, n_pad) so that
         2 * feature_tile + f32_accumulator + constants  <=  ~5/8 of VMEM."""
    budget = (phys_vmem * 5) // 8                 # headroom for compiler scratch
    c_pad = _round_up(C, 8)
    l_pad = max(_round_up(L, 128), 128)
    # w_t + packed (bias, gamma, beta) are double-buffered by the pipeline even
    # though their block index never changes; account for both buffers.
    const_bytes = 2 * c_pad * l_pad * 4 + 2 * 8 * l_pad * 4
    out_bytes = 2 * 8 * l_pad * 4
    avail = max(budget - const_bytes - out_bytes, 1 << 20)

    # Per feature element: 2 pipeline buffers (input dtype) + f32 accumulator.
    per_elem = 2 * feat_itemsize + 4

    n_pad = _round_up(N, 128)

    # Batch tile: divisor of B that is == B or a multiple of 8 (so the (bb, L)
    # output block obeys the (8, 128) sublane rule).  Largest that fits.
    cands = [d for d in range(B, 0, -1)
             if B % d == 0 and (d == B or d % 8 == 0) and d <= 64]
    if not cands:
        cands = [B]
    bb = cands[-1]
    for d in cands:
        if d * c_pad * 128 * per_elem <= avail:
            bb = d
            break

    def _max_bn(d):
        m = max(128, (avail // (d * c_pad * per_elem)) // 128 * 128)
        return min(n_pad, m)

    # If the 'parallel' B axis collapsed to one step, prefer a smaller bb that
    # still yields >= 2 MiB feature tiles (keeps both v7x TensorCores busy at
    # ~zero cost; on single-TC v5e/v6e the difference is noise).
    if B // bb < 2:
        for d in cands:
            if d < bb and B // d >= 2 and \
                    d * c_pad * _max_bn(d) * feat_itemsize >= (2 << 20):
                bb = d
                break

    # N tile: largest multiple of 128 dividing n_pad that fits the byte budget.
    blocks = n_pad // 128
    kmax = max(1, min(blocks, _max_bn(bb) // 128))
    bn = 128
    for k in range(kmax, 0, -1):
        if blocks % k == 0:
            bn = 128 * k
            break
    return bb, bn, n_pad


# --------------------------------------------------------------------------
# Wrapper
# --------------------------------------------------------------------------
def feat_map_pallas(features_1, coords, linear_w, linear_b, ln_gamma, ln_beta,
                    *, block_b=None, block_n=None, materialize_features=True):
    """Mirrors feature_map_AE.feat_map (isConv=False): returns (features_3, coords).

    With materialize_features=False, returns (latent, coords) with latent of
    shape (B, L) -- for consumers that can fuse the broadcast/concat (which is
    otherwise the dominant HBM traffic of this op).
    """
    B, C, N = features_1.shape
    L = linear_w.shape[0]
    itemsize = jnp.dtype(features_1.dtype).itemsize

    phys = _physical_vmem_bytes()
    bb, bn, n_pad = _pick_tiles(B, C, N, itemsize, L, phys)
    if block_b is not None:
        bb = block_b
    if block_n is not None:
        bn = block_n
    assert B % bb == 0 and (bb == B or bb % 8 == 0), (B, bb)
    assert bn % 128 == 0 and n_pad % bn == 0, (N, n_pad, bn)

    # Zero-pad N up to a lane multiple (zeros are harmless: mean divides by the
    # true N).  Keeps the tiled, double-buffered path for arbitrary N.
    feats = features_1
    if n_pad != N:
        feats = jnp.pad(features_1, ((0, 0), (0, 0), (0, n_pad - N)))

    # Layout work hoisted out of the kernel (done once by XLA):
    w_t = jnp.asarray(linear_w, jnp.float32).T                      # (C, L)
    params = jnp.stack([
        jnp.asarray(linear_b, jnp.float32),
        jnp.asarray(ln_gamma, jnp.float32),
        jnp.asarray(ln_beta, jnp.float32),
    ], axis=0)                                                      # (3, L)

    # Estimated VMEM footprint -> explicit scoped-VMEM limit (valid on every
    # generation; never exceeds physical VMEM).
    c_pad = _round_up(C, 8)
    l_pad = max(_round_up(L, 128), 128)
    est = (2 * bb * c_pad * bn * itemsize          # double-buffered feature tiles
           + bb * c_pad * bn * 4                   # f32 accumulator scratch
           + 2 * c_pad * l_pad * 4                 # w_t (both pipeline buffers)
           + 2 * 8 * l_pad * 4                     # params
           + 2 * 8 * l_pad * 4)                    # output tile
    vmem_limit = int(min(phys - (4 << 20),
                         max(est + (8 << 20), 2 * est, 16 << 20)))

    cost = pl.CostEstimate(
        flops=int(B * C * n_pad + 2 * B * C * L + 8 * B * L),
        transcendentals=int(B),
        bytes_accessed=int(B * C * n_pad * itemsize + B * L * 4
                           + C * L * 4 + 3 * L * 4),
    )

    grid = (B // bb, n_pad // bn)   # N axis last + 'arbitrary' (see kernel note)

    latent = pl.pallas_call(
        functools.partial(latent_kernel, n_points=N),
        out_shape=jax.ShapeDtypeStruct((B, L), jnp.float32),
        grid_spec=pltpu.PrefetchScalarGridSpec(
            num_scalar_prefetch=0,
            grid=grid,
            in_specs=[
                pl.BlockSpec((bb, C, bn), lambda bi, ni: (bi, 0, ni)),
                pl.BlockSpec((C, L), lambda bi, ni: (0, 0)),
                pl.BlockSpec((3, L), lambda bi, ni: (0, 0)),
            ],
            out_specs=pl.BlockSpec((bb, L), lambda bi, ni: (bi, 0)),
            scratch_shapes=[pltpu.VMEM((bb, C, bn), jnp.float32)],
        ),
        compiler_params=pltpu.CompilerParams(
            dimension_semantics=("parallel", "arbitrary"),
            vmem_limit_bytes=vmem_limit),
        cost_estimate=cost,
    )(feats, w_t, params)

    if not materialize_features:
        return latent, coords

    # Redundant-data expansion (broadcast over N + concat with coords) kept in
    # the wrapper for module-faithful output; it is pure data movement and the
    # dominant HBM traffic -- fuse downstream when possible.
    features_3 = jnp.concatenate(
        [coords, jnp.broadcast_to(latent[:, :, None], (B, L, N))], axis=1)
    return features_3, coords


# --------------------------------------------------------------------------
# Pure-JAX reference (mirrors the PyTorch isConv=False path)
# --------------------------------------------------------------------------
def feat_map_reference(features_1, coords, linear_w, linear_b, ln_gamma,
                       ln_beta):
    features_2 = jnp.mean(features_1, axis=2)                       # (B, C)
    linear_layer = features_2 @ linear_w.T + linear_b               # (B, L)
    mu = jnp.mean(linear_layer, axis=-1, keepdims=True)
    var = jnp.mean((linear_layer - mu) ** 2, axis=-1, keepdims=True)
    ln = (linear_layer - mu) / jnp.sqrt(var + LN_EPS) * ln_gamma + ln_beta
    feat_3 = ln[:, :, None]                                         # (B, L, 1)
    features_3 = jnp.broadcast_to(
        feat_3, (feat_3.shape[0], feat_3.shape[1], features_1.shape[2]))
    return jnp.concatenate([coords, features_3], axis=1), coords


if __name__ == "__main__":
    # Small, module-consistent sizes.
    batch = 2
    num_of_feat = 4
    width_multiplier = 2
    C = num_of_feat * width_multiplier      # backbone feature channels = 8
    latent_size = 8
    num_points = 200                        # NOT a multiple of 128 -> pad path

    key = jax.random.PRNGKey(0)
    k_feat, k_coord, k_w, k_b = jax.random.split(key, 4)

    # Synthetic stand-in for MPVCNN2(ply) -> (features_1, coords).
    features_1 = jax.random.normal(k_feat, (batch, C, num_points),
                                   dtype=jnp.float32)
    coords = jax.random.normal(k_coord, (batch, 3, num_points),
                               dtype=jnp.float32)

    # Deterministic parameter init (nn.Linear-like fan_in scaling).
    bound = 1.0 / jnp.sqrt(jnp.float32(C))
    linear_w = jax.random.uniform(k_w, (latent_size, C), jnp.float32,
                                  minval=-bound, maxval=bound)
    linear_b = jax.random.uniform(k_b, (latent_size,), jnp.float32,
                                  minval=-bound, maxval=bound)
    ln_gamma = jnp.ones((latent_size,), jnp.float32)   # LayerNorm defaults
    ln_beta = jnp.zeros((latent_size,), jnp.float32)

    ref, ref_coords = feat_map_reference(features_1, coords, linear_w,
                                         linear_b, ln_gamma, ln_beta)

    # 1) Auto-selected tiles (single N step for this tiny shape).
    out_a, coords_a = feat_map_pallas(features_1, coords, linear_w, linear_b,
                                      ln_gamma, ln_beta)
    out_a = jax.block_until_ready(out_a)

    # 2) Forced bn=128 -> exercises the multi-step accumulator path.
    out_b, coords_b = feat_map_pallas(features_1, coords, linear_w, linear_b,
                                      ln_gamma, ln_beta, block_n=128)
    out_b = jax.block_until_ready(out_b)

    assert out_a.shape == (batch, 3 + latent_size, num_points)
    assert out_b.shape == (batch, 3 + latent_size, num_points)
    assert jnp.allclose(out_a, ref, atol=1e-5, rtol=1e-5), "mismatch (auto tiles)"
    assert jnp.allclose(out_b, ref, atol=1e-5, rtol=1e-5), "mismatch (bn=128)"
    assert jnp.allclose(coords_a, ref_coords), "coords mismatch"
    assert jnp.allclose(coords_b, ref_coords), "coords mismatch"

    print("KERNEL_OK")
</pallas_src>

<mosaic_0001>
module attributes {stable_mosaic.version = 11 : i64} {
  func.func @latent_kernel(%arg0: i32, %arg1: i32, %arg2: memref<2x8x256xf32, #tpu.memory_space<vmem>>, %arg3: memref<8x8xf32, #tpu.memory_space<vmem>>, %arg4: memref<3x8xf32, #tpu.memory_space<vmem>>, %arg5: memref<2x8xf32, #tpu.memory_space<vmem>>, %arg6: memref<2x8x256xf32, #tpu.memory_space<vmem>>) attributes {dimension_semantics = [#tpu.dimension_semantics<parallel>, #tpu.dimension_semantics<arbitrary>], iteration_bounds = array<i64: 1, 1>, scalar_prefetch = 0 : i64, scratch_operands = 1 : i64, tpu.core_type = #tpu.core_type<tc>, window_params = [{transform_indices = @transform_0, window_bounds = array<i64: 2, 8, 256>}, {pipeline_mode = #tpu.pipeline_mode<synchronous>, transform_indices = @transform_1, window_bounds = array<i64: 8, 8>}, {pipeline_mode = #tpu.pipeline_mode<synchronous>, transform_indices = @transform_2, window_bounds = array<i64: 3, 8>}, {transform_indices = @transform_3, window_bounds = array<i64: 2, 8>}]} {
    %c0_i32 = arith.constant 0 : i32
    %0 = arith.cmpi eq, %arg1, %c0_i32 : i32
    %1 = arith.extui %0 : i1 to i32
    %c0_i32_0 = arith.constant 0 : i32
    %2 = arith.cmpi ne, %1, %c0_i32_0 : i32
    scf.if %2 {
      %cst = arith.constant 0.000000e+00 : f32
      %10 = vector.broadcast %cst : f32 to vector<2x8x256xf32>
      %c0_11 = arith.constant 0 : index
      %c0_12 = arith.constant 0 : index
      %c0_13 = arith.constant 0 : index
      %11 = vector.load %arg6[%c0_11, %c0_12, %c0_13] : memref<2x8x256xf32, #tpu.memory_space<vmem>>, vector<2x8x256xf32>
      tpu.vector_store %arg6[%c0_11, %c0_12, %c0_13], %10 {strides = array<i32>} : memref<2x8x256xf32, #tpu.memory_space<vmem>>, vector<2x8x256xf32>,
    } else {
    }
    %c0 = arith.constant 0 : index
    %c0_1 = arith.constant 0 : index
    %c0_2 = arith.constant 0 : index
    %3 = vector.load %arg6[%c0, %c0_1, %c0_2] : memref<2x8x256xf32, #tpu.memory_space<vmem>>, vector<2x8x256xf32>
    %c0_3 = arith.constant 0 : index
    %c0_4 = arith.constant 0 : index
    %c0_5 = arith.constant 0 : index
    %4 = vector.load %arg2[%c0_3, %c0_4, %c0_5] : memref<2x8x256xf32, #tpu.memory_space<vmem>>, vector<2x8x256xf32>
    %5 = arith.addf %3, %4 : vector<2x8x256xf32>
    %c0_6 = arith.constant 0 : index
    %c0_7 = arith.constant 0 : index
    %c0_8 = arith.constant 0 : index
    %6 = vector.load %arg6[%c0_6, %c0_7, %c0_8] : memref<2x8x256xf32, #tpu.memory_space<vmem>>, vector<2x8x256xf32>
    tpu.vector_store %arg6[%c0_6, %c0_7, %c0_8], %5 {strides = array<i32>} : memref<2x8x256xf32, #tpu.memory_space<vmem>>, vector<2x8x256xf32>,
    %c0_i32_9 = arith.constant 0 : i32
    %7 = arith.cmpi eq, %arg1, %c0_i32_9 : i32
    %8 = arith.extui %7 : i1 to i32
    %c0_i32_10 = arith.constant 0 : i32
    %9 = arith.cmpi ne, %8, %c0_i32_10 : i32
    scf.if %9 {
      %c0_11 = arith.constant 0 : index
      %c0_12 = arith.constant 0 : index
      %c0_13 = arith.constant 0 : index
      %10 = vector.load %arg6[%c0_11, %c0_12, %c0_13] : memref<2x8x256xf32, #tpu.memory_space<vmem>>, vector<2x8x256xf32>
      %cst = arith.constant dense<0.000000e+00> : vector<2x8xf32>
      %11 = vector.multi_reduction <add>, %10, %cst [2] : vector<2x8x256xf32> to vector<2x8xf32>
      %cst_14 = arith.constant 5.000000e-03 : f32
      %12 = vector.broadcast %cst_14 : f32 to vector<2x8xf32>
      %13 = arith.mulf %11, %12 : vector<2x8xf32>
      %c0_15 = arith.constant 0 : index
      %c0_16 = arith.constant 0 : index
      %14 = vector.load %arg4[%c0_15, %c0_16] : memref<3x8xf32, #tpu.memory_space<vmem>>, vector<1x8xf32>
      %c1 = arith.constant 1 : index
      %c0_17 = arith.constant 0 : index
      %15 = vector.load %arg4[%c1, %c0_17] : memref<3x8xf32, #tpu.memory_space<vmem>>, vector<1x8xf32>
      %c2 = arith.constant 2 : index
      %c0_18 = arith.constant 0 : index
      %16 = vector.load %arg4[%c2, %c0_18] : memref<3x8xf32, #tpu.memory_space<vmem>>, vector<1x8xf32>
      %c0_19 = arith.constant 0 : index
      %c0_20 = arith.constant 0 : index
      %17 = vector.load %arg3[%c0_19, %c0_20] : memref<8x8xf32, #tpu.memory_space<vmem>>, vector<8x8xf32>
      %cst_21 = arith.constant dense<0.000000e+00> : vector<2x8xf32>
      %18 = tpu.matmul %13, %17, %cst_21 {dimension_numbers = #tpu.dot_dimension_numbers<[1], [0], [0], [1], [0, 0, 1, 1], [], []>} : vector<2x8xf32>, vector<8x8xf32>, vector<2x8xf32> -> vector<2x8xf32>
      %19 = vector.broadcast %14 : vector<1x8xf32> to vector<2x8xf32>
      %20 = arith.addf %18, %19 : vector<2x8xf32>
      %cst_22 = arith.constant dense<0.000000e+00> : vector<2xf32>
      %21 = vector.multi_reduction <add>, %20, %cst_22 [1] : vector<2x8xf32> to vector<2xf32>
      %22 = vector.shape_cast %21 : vector<2xf32> to vector<2x1xf32>
      %cst_23 = arith.constant 8.000000e+00 : f32
      %23 = vector.broadcast %cst_23 : f32 to vector<2x1xf32>
      %24 = arith.divf %22, %23 : vector<2x1xf32>
      %25 = vector.broadcast %24 : vector<2x1xf32> to vector<2x8xf32>
      %26 = arith.subf %20, %25 : vector<2x8xf32>
      %27 = vector.broadcast %24 : vector<2x1xf32> to vector<2x8xf32>
      %28 = arith.subf %20, %27 : vector<2x8xf32>
      %29 = arith.mulf %26, %28 : vector<2x8xf32>
      %cst_24 = arith.constant dense<0.000000e+00> : vector<2xf32>
      %30 = vector.multi_reduction <add>, %29, %cst_24 [1] : vector<2x8xf32> to vector<2xf32>
      %31 = vector.shape_cast %30 : vector<2xf32> to vector<2x1xf32>
      %cst_25 = arith.constant 8.000000e+00 : f32
      %32 = vector.broadcast %cst_25 : f32 to vector<2x1xf32>
      %33 = arith.divf %31, %32 : vector<2x1xf32>
      %34 = vector.broadcast %24 : vector<2x1xf32> to vector<2x8xf32>
      %35 = arith.subf %20, %34 : vector<2x8xf32>
      %cst_26 = arith.constant 9.99999974E-6 : f32
      %36 = vector.broadcast %cst_26 : f32 to vector<2x1xf32>
      %37 = arith.addf %33, %36 : vector<2x1xf32>
      %38 = math.rsqrt %37 : vector<2x1xf32>
      %39 = vector.broadcast %38 : vector<2x1xf32> to vector<2x8xf32>
      %40 = arith.mulf %35, %39 : vector<2x8xf32>
      %41 = vector.broadcast %15 : vector<1x8xf32> to vector<2x8xf32>
      %42 = arith.mulf %40, %41 : vector<2x8xf32>
      %43 = vector.broadcast %16 : vector<1x8xf32> to vector<2x8xf32>
      %44 = arith.addf %42, %43 : vector<2x8xf32>
      %c0_27 = arith.constant 0 : index
      %c0_28 = arith.constant 0 : index
      %45 = vector.load %arg5[%c0_27, %c0_28] : memref<2x8xf32, #tpu.memory_space<vmem>>, vector<2x8xf32>
      tpu.vector_store %arg5[%c0_27, %c0_28], %44 {strides = array<i32>} : memref<2x8xf32, #tpu.memory_space<vmem>>, vector<2x8xf32>,
    } else {
    }
    return
  }
  func.func @transform_0(%arg0: i32, %arg1: i32) -> (i32, i32, i32) {
    %c0_i32 = arith.constant 0 : i32
    %c0_i32_0 = arith.constant 0 : i32
    return %arg0, %c0_i32, %arg1 : i32, i32, i32
  }
  func.func @transform_1(%arg0: i32, %arg1: i32) -> (i32, i32) {
    %c0_i32 = arith.constant 0 : i32
    %c0_i32_0 = arith.constant 0 : i32
    %c0_i32_1 = arith.constant 0 : i32
    return %c0_i32, %c0_i32_0 : i32, i32
  }
  func.func @transform_2(%arg0: i32, %arg1: i32) -> (i32, i32) {
    %c0_i32 = arith.constant 0 : i32
    %c0_i32_0 = arith.constant 0 : i32
    %c0_i32_1 = arith.constant 0 : i32
    return %c0_i32, %c0_i32_0 : i32, i32
  }
  func.func @transform_3(%arg0: i32, %arg1: i32) -> (i32, i32) {
    %c0_i32 = arith.constant 0 : i32
    %c0_i32_0 = arith.constant 0 : i32
    return %arg0, %c0_i32 : i32, i32
  }
}

</mosaic_0001>

<bundles_post_ra>
// kernel: tpu_custom_call.1
= control target key start
LH: loop header
LB: loop body
LE: loop exit
PB: predicated region body
PF: predicated region fallthrough
CT: control target
= control target key end

     0   :  { %8 = vsyncpa [#allocation4], 0  ;;  %s345_s0 = inlined_call_operand.hbm [shape: f32[2,8,256], index: 0, kind: input, shape index: {}]   ;;  %s346_s1 = inlined_call_operand.hbm [shape: f32[8,8], index: 1, kind: input, shape index: {}]   ;;  %s347_s2 = inlined_call_operand.hbm [shape: f32[3,8], index: 2, kind: input, shape index: {}]   ;;  %s348_s3 = inlined_call_operand.hbm [shape: f32[2,8], index: 3, kind: output, shape index: {}]  }
   0x1   :  { %9 = vsyncpa [#allocation7], 0  ;;  %s29_s14 = sshll.u32 %s346_s1, 4  ;;  %s30_s14 = int_to_ptr.hbm [resolvable:$true] %s29_s14 }
   0x2   :  { %10 = vsyncpa [#allocation5], 0  ;;  %s303_s15 = smov [#allocation6]   ;;  %s15_s19 = sshll.u32 %s345_s0, 4  ;;  %s16_s19 = int_to_ptr.hbm [resolvable:$true] %s15_s19 }
   0x3   :  { %s31_s16 = sshll.u32 %s303_s15, 4  ;;  %s304_s20 = smov [#allocation3]   ;;  %s32_s16 = int_to_ptr.vmem [resolvable:$true] %s31_s16 }
   0x4   :  { %34 = dma.hbm_to_vmem [thread:$0]  %s30_s14, 128, %s32_s16, [#allocation7]  }
   0x5   :  { %s17_s21 = sshll.u32 %s304_s20, 4  ;;  %s305_s22 = smov 256   ;;  %s18_s21 = int_to_ptr.vmem [resolvable:$true] %s17_s21 }
   0x6   :  { %s306_s23 = smov 16   ;;  %s40_s1 = sshll.u32 %s347_s2, 4  ;;  %s41_s1 = int_to_ptr.hbm [resolvable:$true] %s40_s1 }
   0x7   :  { %23 = dma.hbm_to_vmem [thread:$0]  %s16_s19, 512, %s18_s21, [#allocation4], %s305_s22, %s305_s22, %s306_s23  }
   0x8   :  { %s307_s26 = smov [#allocation8]  }
   0x9   :  { %s42_s27 = sshll.u32 %s307_s26, 4  ;;  %s43_s27 = int_to_ptr.vmem [resolvable:$true] %s42_s27 }
   0xa   :  { %45 = dma.hbm_to_vmem [thread:$0]  %s41_s1, 64, %s43_s27, [#allocation7]  }
   0xb   :  { %297 = dma.done.wait [#allocation4], 512  }
   0xc   :  { %298 = vsyncadd [#allocation4], 4294966784 }
   0xd   :  { %299 = dma.done.wait [#allocation7], 192  }
   0xe   :  { %300 = vsyncadd [#allocation7], 4294967104  ;;  %v70_v0 = vld [vmem:[#allocation3] sm:$0xff]  ;;  %v71_v1 = vld [vmem:[#allocation3 + $0x8] sm:$0xff]  ;;  %v104_v8 = vlaneseq  ;;  %vm108_vm0 = vcmask 1041409   ;;  %vm110_vm1 = vcmask 64512  }
   0xf   :  { %v89_v2 = vadd.f32 %v71_v1, %v70_v0  ;;  %v72_v3 = vld [vmem:[#allocation3 + $0x10] sm:$0xff]  ;;  %v73_v4 = vld [vmem:[#allocation3 + $0x18] sm:$0xff]  ;;  %v100_v6 = vld [vmem:[#allocation6] sm:$0xff]  ;;  %vm133_vm2 = vcmask 58368   ;;  %v308_v20 = vmov 8.0   ;;  %s309_s0 = smov [#allocation9]  }
  0x10   :  { %v92_v5 = vadd.f32 %v73_v4, %v72_v3  ;;  %128 = vmatpush.msra.mxu0 %v100_v6  ;;  %v105_v9 = vand.u32 127, %v104_v8  ;;  %v194_v16 = vld [vmem:[#allocation8] ss:$0 sm:$0xff]  ;;  %197 = vrcp.f32 %v308_v20  ;;  %v195_v41 = vld [vmem:[#allocation8 + $0x1] ss:$0 sm:$0xff]  ;;  %s173_s2 = sshll.u32 %s309_s0, 4  ;;  %s174_s2 = int_to_ptr.vmem [resolvable:$true] %s173_s2 }
  0x11   :  { %90 = vadd.xlane.f32.xlu0 %v89_v2  ;;  %v196_v44 = vld [vmem:[#allocation8 + $0x2] ss:$0 sm:$0xff]  ;;  %s175_s30 = sshll.u32 %s348_s3, 4  ;;  %s176_s30 = int_to_ptr.hbm [resolvable:$true] %s175_s30 }
  0x16   :  { %v198_v21 = vpop.eup %197 }
  0x17   :  { %v138_v22 = vmul.f32 8.0, %v198_v21  ;;  %vm142_vm3 = vweird.f32 %v198_v21 }
  0x19   :  { %93 = vadd.xlane.f32.xlu0 %v92_v5  ;;  %v139_v23 = vsub.f32 1.0, %v138_v22 }
  0x1b   :  { %v140_v24 = vmul.f32 %v198_v21, %v139_v23 }
  0x1d   :  { %v141_v25 = vadd.f32 %v198_v21, %v140_v24 }
  0x1f   :  { %v143_v26 = vsel %vm142_vm3, %v198_v21, %v141_v25 }
  0x84   :  { %v91_v7 = vpop.xlane.xlu0 %90 }
  0x85   :  { %v95_v10 = vmul.f32 0.005, %v91_v7 }
  0x87   :  { %v106_v13 = vperm.slane %v95_v10, %v105_v9 }
  0x8c   :  { %v94_v11 = vpop.xlane.xlu0 %93 }
  0x8d   :  { %v96_v12 = vmul.f32 0.005, %v94_v11 }
  0x8f   :  { %v107_v14 = vperm.slane %v96_v12, %v105_v9 }
  0x91   :  { %v109_v15 = vsel %vm108_vm0, %v107_v14, %v106_v13 }
  0x92   :  { %186 = vmatmul.msk.f32.vlgmr.msra.gmra.mxu0 %vm110_vm1, %v109_v15 }
 0x10f   :  { %v130_v17 = vpop.f32.mrf.mxu0 }
 0x110   :  { %v131_v18 = vadd.f32 %v194_v16, %v130_v17 }
 0x112   :  { %v134_v19 = vsel %vm133_vm2, %v131_v18, 0.0 }
 0x113   :  { %135 = vadd.xlane.f32.xlu1 %v134_v19 }
 0x186   :  { %v136_v27 = vpop.xlane.xlu1 %135 }
 0x187   :  { %v144_v28 = vmul.f32 %v143_v26, %v136_v27 }
 0x189   :  { %v145_v29 = vsub.f32 %v131_v18, %v144_v28 }
 0x18b   :  { %v146_v30 = vmul.f32 %v145_v29, %v145_v29 }
 0x18d   :  { %v147_v31 = vsel %vm133_vm2, %v146_v30, 0.0 }
 0x18e   :  { %148 = vadd.xlane.f32.xlu1 %v147_v31 }
 0x201   :  { %v149_v32 = vpop.xlane.xlu1 %148 }
 0x202   :  { %v150_v33 = vmul.f32 %v149_v32, %v143_v26 }
 0x204   :  { %v151_v34 = vadd.f32 1e-05, %v150_v33 }
 0x206   :  { %199 = vrsqrt.f32 %v151_v34  ;;  %vm158_vm5 = vweird.f32 %v151_v34 }
 0x20c   :  { %v200_v35 = vpop.eup %199 }
 0x20d   :  { %v153_v36 = vmul.f32 %v200_v35, %v151_v34  ;;  %vm159_vm4 = vweird.f32 %v200_v35 }
 0x20e   :  { %vm160_vm6 = vmor %vm158_vm5, %vm159_vm4 }
 0x20f   :  { %v154_v37 = vmul.f32 %v200_v35, %v153_v36 }
 0x211   :  { %v155_v38 = vmul.f32 0.5, %v154_v37 }
 0x213   :  { %v156_v39 = vsub.f32 1.5, %v155_v38 }
 0x215   :  { %v157_v40 = vmul.f32 %v200_v35, %v156_v39 }
 0x217   :  { %v161_v42 = vsel %vm160_vm6, %v200_v35, %v157_v40 }
 0x218   :  { %v162_v43 = vmul.f32 %v161_v42, %v145_v29 }
 0x21a   :  { %v164_v45 = vmul.f32 %v195_v41, %v162_v43 }
 0x21c   :  { %v166_v46 = vadd.f32 %v196_v44, %v164_v45 }
 0x21e   :  { %167 = vst.msk [vmem:[#allocation9] sm:$0x3] %vm133_vm2, %v166_v46 }
 0x21f   :  { %178 = dma.vmem_to_hbm [thread:$0]  %s174_s2, 32, %s176_s30, [#allocation5]  }
 0x220   :  { %301 = dma.done.wait [#allocation5], 32  }
 0x221   :  { %302 = vsyncadd [#allocation5], 4294967264 }
 0x222   :  { %183 = vsyncpa [#allocation4], 1 }
 0x223   :  { %184 = vsyncpa [#allocation7], 1 }
 0x224   :  { %185 = vsyncpa [#allocation5], 1 }

</bundles_post_ra>
